<compile_context>
chip_gen: v5e
topology: v5e:2x2
jax: 0.10.0
libtpu: 0.0.40
codegen_flags: <defaults>
</compile_context>

<pallas_src>
import functools

import jax
import jax.numpy as jnp
from jax.experimental import pallas as pl
from jax.experimental.pallas import tpu as pltpu


# ---------------------------------------------------------------------------
# Kernel
# ---------------------------------------------------------------------------
def mobius_kernel(h_ref, r_ref, out_ref, *, d):
    f32 = jnp.float32
    # Lane-aligned (multiples of 128) static slices of the packed tiles.
    hr = h_ref[:, 0:d].astype(f32)
    hi = h_ref[:, d:2 * d].astype(f32)

    ra_re = r_ref[:, 0 * d:1 * d].astype(f32)
    ra_im = r_ref[:, 1 * d:2 * d].astype(f32)
    rb_re = r_ref[:, 2 * d:3 * d].astype(f32)
    rb_im = r_ref[:, 3 * d:4 * d].astype(f32)
    rc_re = r_ref[:, 4 * d:5 * d].astype(f32)
    rc_im = r_ref[:, 5 * d:6 * d].astype(f32)
    rd_re = r_ref[:, 6 * d:7 * d].astype(f32)
    rd_im = r_ref[:, 7 * d:8 * d].astype(f32)

    # top = h * r_a + r_b
    top_re = hr * ra_re - hi * ra_im + rb_re
    top_im = hr * ra_im + hi * ra_re + rb_im
    # bottom = h * r_c + r_d
    bot_re = hr * rc_re - hi * rc_im + rd_re
    bot_im = hr * rc_im + hi * rc_re + rd_im

    # complex division top / bottom (no zero guard, matching PyTorch)
    denom = bot_re * bot_re + bot_im * bot_im
    # Exact reciprocal = EUP estimate + VALU Newton refinement.  The VALU has
    # 2-5x slack under the HBM DMA for this kernel, so the extra refinement is
    # free; approx=True would loosen numerics vs. the torch true-divide.
    inv = pl.reciprocal(denom, approx=False)
    out_re = (top_re * bot_re + top_im * bot_im) * inv
    out_im = (top_im * bot_re - top_re * bot_im) * inv

    out_ref[:, 0:d] = out_re.astype(out_ref.dtype)
    out_ref[:, d:2 * d] = out_im.astype(out_ref.dtype)


# ---------------------------------------------------------------------------
# Tiling / VMEM budgeting
# ---------------------------------------------------------------------------
_NUM_BUFFERS = 2          # Pallas double-buffers every BlockSpec'd array
_STREAM_WIDTH_UNITS = 12  # h(2) + r(8) + out(2) components of width D per row
_TEMP_F32_UNITS = 16      # conservative count of live (rows, D) f32 temporaries


def _sublane_align(dtype):
    # Sub-32-bit dtypes pack along sublanes: partial row tiles must be 16-row
    # (bf16) / 32-row (int8) aligned instead of 8.
    return {4: 8, 2: 16, 1: 32}[jnp.dtype(dtype).itemsize]


def _vmem_limit_bytes():
    """Generation-aware scoped-VMEM limit (~48 MiB on 64 MiB/TC chips, 56 MiB else)."""
    try:
        cap = int(pltpu.get_tpu_info().vmem_capacity_bytes)
    except Exception:
        cap = 64 << 20  # conservative per-core fallback (v7x-sized)
    return int(max(32 << 20, min(cap - (16 << 20), cap * 3 // 4, 56 << 20)))


def _choose_block_rows(B, D, dtype, vmem_limit):
    itemsize = jnp.dtype(dtype).itemsize
    align = _sublane_align(dtype)
    budget = vmem_limit - (8 << 20)  # headroom for compiler-internal scratch
    bytes_per_row = D * (_NUM_BUFFERS * _STREAM_WIDTH_UNITS * itemsize
                         + _TEMP_F32_UNITS * 4)
    rows = max(align, (budget // bytes_per_row) // align * align)
    if rows >= B:
        # Whole problem fits in one grid step.  Split into >= 2 steps when the
        # batch allows it so a 2-TensorCore chip (v7x) can shard the "parallel"
        # row axis; the extra step is negligible on single-core v5e/v6e.
        if B >= 2 * align:
            rows = ((pl.cdiv(B, 2) + align - 1) // align) * align
        else:
            rows = B
    return rows


# ---------------------------------------------------------------------------
# Wrappers
# ---------------------------------------------------------------------------
def mobius_mult_packed(h_packed, r_packed, *, block_rows=None):
    """Packed Mobius multiplication.

    h_packed: (B, 2*D)  = [h_re | h_im]
    r_packed: (B, 8*D)  = [a_re | a_im | b_re | b_im | c_re | c_im | d_re | d_im]
    returns:  (B, 2*D)  = [out_re | out_im], same dtype as the inputs.
    """
    B, two_d = h_packed.shape
    assert two_d % 2 == 0
    D = two_d // 2
    assert D % 128 == 0, "complex dim must be a multiple of the 128-lane axis"
    assert r_packed.shape == (B, 8 * D)
    assert r_packed.dtype == h_packed.dtype
    dtype = h_packed.dtype
    align = _sublane_align(dtype)

    vmem_limit = _vmem_limit_bytes()
    if block_rows is None:
        block_rows = _choose_block_rows(B, D, dtype, vmem_limit)
    block_rows = min(block_rows, B)
    if block_rows < B:
        assert block_rows % align == 0, (
            f"partial-extent row tiles must be multiples of {align} for {dtype}")

    grid = (pl.cdiv(B, block_rows),)

    h_spec = pl.BlockSpec((block_rows, 2 * D), lambda i: (i, 0))
    r_spec = pl.BlockSpec((block_rows, 8 * D), lambda i: (i, 0))
    out_spec = pl.BlockSpec((block_rows, 2 * D), lambda i: (i, 0))

    return pl.pallas_call(
        functools.partial(mobius_kernel, d=D),
        out_shape=jax.ShapeDtypeStruct((B, 2 * D), dtype),
        grid=grid,
        in_specs=[h_spec, r_spec],
        out_specs=out_spec,
        compiler_params=pltpu.CompilerParams(
            dimension_semantics=("parallel",),
            vmem_limit_bytes=vmem_limit),
    )(h_packed, r_packed)


def mobius_mult(h, r, *, block_rows=None):
    """PyTorch-signature wrapper: h = (h_re, h_im), r = ((a_re, a_im), ..., (d_re, d_im)).

    NOTE: this packs via jnp.concatenate, which costs one extra HBM read+write
    pass.  Prefer storing the embeddings packed and calling mobius_mult_packed.
    """
    h_re, _ = h
    D = h_re.shape[-1]
    h_packed = jnp.concatenate(h, axis=-1)
    r_packed = jnp.concatenate([c for pair in r for c in pair], axis=-1)
    out = mobius_mult_packed(h_packed, r_packed, block_rows=block_rows)
    return out[:, :D], out[:, D:]


# ---------------------------------------------------------------------------
# Plain-JAX reference (mirrors ComplexMult/Add/Div composition, f32 math)
# ---------------------------------------------------------------------------
def mobius_mult_ref(h, r):
    up = lambda x: x.astype(jnp.float32)
    h_re, h_im = map(up, h)
    (ra_re, ra_im), (rb_re, rb_im), (rc_re, rc_im), (rd_re, rd_im) = \
        tuple(tuple(map(up, pair)) for pair in r)
    top_re = h_re * ra_re - h_im * ra_im + rb_re
    top_im = h_re * ra_im + h_im * ra_re + rb_im
    bot_re = h_re * rc_re - h_im * rc_im + rd_re
    bot_im = h_re * rc_im + h_im * rc_re + rd_im
    denom = bot_re ** 2 + bot_im ** 2
    return ((top_re * bot_re + top_im * bot_im) / denom,
            (top_im * bot_re - top_re * bot_im) / denom)


# ---------------------------------------------------------------------------
# Tests
# ---------------------------------------------------------------------------
if __name__ == "__main__":
    key = jax.random.PRNGKey(0)

    def make_components(B, D, dtype, case_key):
        keys = jax.random.split(case_key, 10)

        def rnd(k, shift=0.0):
            return (jax.random.normal(k, (B, D), jnp.float32) + shift).astype(dtype)

        h = (rnd(keys[0]), rnd(keys[1]))
        ra = (rnd(keys[2]), rnd(keys[3]))
        rb = (rnd(keys[4]), rnd(keys[5]))
        # Shift r_c, r_d away from zero so the denominator stays well conditioned.
        rc = (rnd(keys[6], 2.0), rnd(keys[7]))
        rd = (rnd(keys[8], 2.0), rnd(keys[9]))
        return h, (ra, rb, rc, rd)

    def pack(h, r):
        h_p = jnp.concatenate(h, axis=-1)
        r_p = jnp.concatenate([c for pair in r for c in pair], axis=-1)
        return h_p, r_p

    def check_packed(out_p, h, r, D, atol, rtol):
        ref_re, ref_im = mobius_mult_ref(h, r)
        out_re = out_p[:, :D].astype(jnp.float32)
        out_im = out_p[:, D:].astype(jnp.float32)
        assert jnp.allclose(out_re, ref_re, atol=atol, rtol=rtol), \
            f"re mismatch: {float(jnp.max(jnp.abs(out_re - ref_re)))}"
        assert jnp.allclose(out_im, ref_im, atol=atol, rtol=rtol), \
            f"im mismatch: {float(jnp.max(jnp.abs(out_im - ref_im)))}"

    # Case 1: f32, default tiling (auto 2-step row grid for dual-TC sharding).
    h, r = make_components(16, 128, jnp.float32, jax.random.fold_in(key, 0))
    h_p, r_p = pack(h, r)
    out = mobius_mult_packed(h_p, r_p)
    jax.block_until_ready(out)
    check_packed(out, h, r, 128, atol=1e-5, rtol=1e-5)

    # Case 2: f32, non-divisible batch with explicit small tile (masked tail block).
    h, r = make_components(20, 128, jnp.float32, jax.random.fold_in(key, 1))
    h_p, r_p = pack(h, r)
    out = mobius_mult_packed(h_p, r_p, block_rows=8)
    jax.block_until_ready(out)
    check_packed(out, h, r, 128, atol=1e-5, rtol=1e-5)

    # Case 3: bf16 I/O (half the HBM bytes), f32 compute in-kernel, 16-row alignment.
    h, r = make_components(48, 128, jnp.bfloat16, jax.random.fold_in(key, 2))
    h_p, r_p = pack(h, r)
    out = mobius_mult_packed(h_p, r_p)
    jax.block_until_ready(out)
    check_packed(out, h, r, 128, atol=2e-2, rtol=2e-2)

    # Case 4: pair-signature compatibility wrapper (matches the PyTorch forward API).
    h, r = make_components(8, 128, jnp.float32, jax.random.fold_in(key, 3))
    out_re, out_im = mobius_mult(h, r)
    jax.block_until_ready((out_re, out_im))
    ref_re, ref_im = mobius_mult_ref(h, r)
    assert jnp.allclose(out_re, ref_re, atol=1e-5, rtol=1e-5)
    assert jnp.allclose(out_im, ref_im, atol=1e-5, rtol=1e-5)

    print("KERNEL_OK")
</pallas_src>

<mosaic_0001>
module attributes {stable_mosaic.version = 11 : i64} {
  func.func @mobius_kernel(%arg0: i32, %arg1: memref<8x256xf32, #tpu.memory_space<vmem>>, %arg2: memref<8x1024xf32, #tpu.memory_space<vmem>>, %arg3: memref<8x256xf32, #tpu.memory_space<vmem>>) attributes {dimension_semantics = [#tpu.dimension_semantics<parallel>], iteration_bounds = array<i64: 2>, scalar_prefetch = 0 : i64, scratch_operands = 0 : i64, tpu.core_type = #tpu.core_type<tc>, window_params = [{transform_indices = @transform_0, window_bounds = array<i64: 8, 256>}, {transform_indices = @transform_1, window_bounds = array<i64: 8, 1024>}, {transform_indices = @transform_2, window_bounds = array<i64: 8, 256>}]} {
    %c0 = arith.constant 0 : index
    %c0_0 = arith.constant 0 : index
    %0 = vector.load %arg1[%c0, %c0_0] : memref<8x256xf32, #tpu.memory_space<vmem>>, vector<8x128xf32>
    %c0_1 = arith.constant 0 : index
    %c128 = arith.constant 128 : index
    %1 = vector.load %arg1[%c0_1, %c128] : memref<8x256xf32, #tpu.memory_space<vmem>>, vector<8x128xf32>
    %c0_2 = arith.constant 0 : index
    %c0_3 = arith.constant 0 : index
    %2 = vector.load %arg2[%c0_2, %c0_3] : memref<8x1024xf32, #tpu.memory_space<vmem>>, vector<8x128xf32>
    %c0_4 = arith.constant 0 : index
    %c128_5 = arith.constant 128 : index
    %3 = vector.load %arg2[%c0_4, %c128_5] : memref<8x1024xf32, #tpu.memory_space<vmem>>, vector<8x128xf32>
    %c0_6 = arith.constant 0 : index
    %c256 = arith.constant 256 : index
    %4 = vector.load %arg2[%c0_6, %c256] : memref<8x1024xf32, #tpu.memory_space<vmem>>, vector<8x128xf32>
    %c0_7 = arith.constant 0 : index
    %c384 = arith.constant 384 : index
    %5 = vector.load %arg2[%c0_7, %c384] : memref<8x1024xf32, #tpu.memory_space<vmem>>, vector<8x128xf32>
    %c0_8 = arith.constant 0 : index
    %c512 = arith.constant 512 : index
    %6 = vector.load %arg2[%c0_8, %c512] : memref<8x1024xf32, #tpu.memory_space<vmem>>, vector<8x128xf32>
    %c0_9 = arith.constant 0 : index
    %c640 = arith.constant 640 : index
    %7 = vector.load %arg2[%c0_9, %c640] : memref<8x1024xf32, #tpu.memory_space<vmem>>, vector<8x128xf32>
    %c0_10 = arith.constant 0 : index
    %c768 = arith.constant 768 : index
    %8 = vector.load %arg2[%c0_10, %c768] : memref<8x1024xf32, #tpu.memory_space<vmem>>, vector<8x128xf32>
    %c0_11 = arith.constant 0 : index
    %c896 = arith.constant 896 : index
    %9 = vector.load %arg2[%c0_11, %c896] : memref<8x1024xf32, #tpu.memory_space<vmem>>, vector<8x128xf32>
    %10 = arith.mulf %0, %2 : vector<8x128xf32>
    %11 = arith.mulf %1, %3 : vector<8x128xf32>
    %12 = arith.subf %10, %11 : vector<8x128xf32>
    %13 = arith.addf %12, %4 : vector<8x128xf32>
    %14 = arith.mulf %0, %3 : vector<8x128xf32>
    %15 = arith.mulf %1, %2 : vector<8x128xf32>
    %16 = arith.addf %14, %15 : vector<8x128xf32>
    %17 = arith.addf %16, %5 : vector<8x128xf32>
    %18 = arith.mulf %0, %6 : vector<8x128xf32>
    %19 = arith.mulf %1, %7 : vector<8x128xf32>
    %20 = arith.subf %18, %19 : vector<8x128xf32>
    %21 = arith.addf %20, %8 : vector<8x128xf32>
    %22 = arith.mulf %0, %7 : vector<8x128xf32>
    %23 = arith.mulf %1, %6 : vector<8x128xf32>
    %24 = arith.addf %22, %23 : vector<8x128xf32>
    %25 = arith.addf %24, %9 : vector<8x128xf32>
    %26 = arith.mulf %21, %21 : vector<8x128xf32>
    %27 = arith.mulf %25, %25 : vector<8x128xf32>
    %28 = arith.addf %26, %27 : vector<8x128xf32>
    %29 = tpu.reciprocal %28 : vector<8x128xf32> -> vector<8x128xf32>
    %30 = arith.mulf %13, %21 : vector<8x128xf32>
    %31 = arith.mulf %17, %25 : vector<8x128xf32>
    %32 = arith.addf %30, %31 : vector<8x128xf32>
    %33 = arith.mulf %32, %29 : vector<8x128xf32>
    %34 = arith.mulf %17, %21 : vector<8x128xf32>
    %35 = arith.mulf %13, %25 : vector<8x128xf32>
    %36 = arith.subf %34, %35 : vector<8x128xf32>
    %37 = arith.mulf %36, %29 : vector<8x128xf32>
    %c0_12 = arith.constant 0 : index
    %c0_13 = arith.constant 0 : index
    %38 = vector.load %arg3[%c0_12, %c0_13] : memref<8x256xf32, #tpu.memory_space<vmem>>, vector<8x128xf32>
    tpu.vector_store %arg3[%c0_12, %c0_13], %33 {strides = array<i32>} : memref<8x256xf32, #tpu.memory_space<vmem>>, vector<8x128xf32>,
    %c0_14 = arith.constant 0 : index
    %c128_15 = arith.constant 128 : index
    %39 = vector.load %arg3[%c0_14, %c128_15] : memref<8x256xf32, #tpu.memory_space<vmem>>, vector<8x128xf32>
    tpu.vector_store %arg3[%c0_14, %c128_15], %37 {strides = array<i32>} : memref<8x256xf32, #tpu.memory_space<vmem>>, vector<8x128xf32>,
    return
  }
  func.func @transform_0(%arg0: i32) -> (i32, i32) {
    %c0_i32 = arith.constant 0 : i32
    %c0_i32_0 = arith.constant 0 : i32
    return %arg0, %c0_i32 : i32, i32
  }
  func.func @transform_1(%arg0: i32) -> (i32, i32) {
    %c0_i32 = arith.constant 0 : i32
    %c0_i32_0 = arith.constant 0 : i32
    return %arg0, %c0_i32 : i32, i32
  }
  func.func @transform_2(%arg0: i32) -> (i32, i32) {
    %c0_i32 = arith.constant 0 : i32
    %c0_i32_0 = arith.constant 0 : i32
    return %arg0, %c0_i32 : i32, i32
  }
}

</mosaic_0001>

<bundles_post_ra>
// kernel: tpu_custom_call.1
= control target key start
LH: loop header
LB: loop body
LE: loop exit
PB: predicated region body
PF: predicated region fallthrough
CT: control target
= control target key end

     0   :  { %7 = vsyncpa [#allocation3], 0  ;;  %s753_s0 = inlined_call_operand.hbm [shape: f32[16,256], index: 0, kind: input, shape index: {}]   ;;  %s754_s1 = inlined_call_operand.hbm [shape: f32[16,1024], index: 1, kind: input, shape index: {}]   ;;  %s755_s2 = inlined_call_operand.hbm [shape: f32[16,256], index: 2, kind: output, shape index: {}]  }
   0x1   :  { %9 = vsyncpa [#allocation3 + $0x1], 0 }
   0x2   :  { %10 = vsyncpa [#allocation6], 0 }
   0x3   :  { %12 = vsyncpa [#allocation6 + $0x1], 0 }
   0x4   :  { %13 = vsyncpa [#allocation4], 0 }
   0x5   :  { %15 = vsyncpa [#allocation4 + $0x1], 0  ;;  %s586_s9 = smov 0   ;;  %s588_s10 = smov 0  }
   0x6   :  { %s590_s11 = smov 0   ;;  %s592_s12 = smov 0  }
   0x7 LB: > { %s607_s13 = sadd.s32 4294967295, %s569_s12   ;;  %s365_s14 = sadd.s32 4294967294, %s569_s12   ;;  %s569_s12 = sphi %s592_s12, %s766_s12   ;;  %s565_s11 = sphi %s590_s11, %s765_s11   ;;  %s561_s10 = sphi %s588_s10, %s764_s10   ;;  %s557_s9 = sphi %s586_s9, %s763_s9  }
   0x8   : > { %s611_s15 = sadd.s32 1, %s569_s12   ;;  %s28_s16 = sadd.s32 1, %s565_s11 }
   0x9   : > { %s25_s17 = ssub.s32 %s569_s12, %s611_s15  ;;  %p35_p0 = scmp.ne.s32.totalorder %s565_s11, %s561_s10 }
   0xa   : > { %p26_p1 = scmp.eq.s32.totalorder %s25_s17, 0  ;;  %p36_p2 = scmp.eq.s32.totalorder %s569_s12, 0 }
   0xb   : > { %p41_p3 = scmp.ne.s32.totalorder %s561_s10, %s557_s9  ;;  %p42_p4 = scmp.eq.s32.totalorder %s607_s13, 0 }
   0xc   : > { %s623_s18 = scalar_select %p26_p1, %s565_s11, %s28_s16  }
   0xd   : > { %p625_p5 = por %p36_p2, %p35_p0  ;;  %p629_p6 = por %p42_p4, %p41_p3 }
   0xe   : > { %p91_p7 = scmp.eq.s32.totalorder %s607_s13, 1  ;;  %p97_p8 = scmp.eq.s32.totalorder %s365_s14, 1 }
   0xf   : > { %p403_p10 = scmp.lt.s32.totalorder %s569_s12, 2  ;;  %s645_s23 = sand.u32 1, %s565_s11  }
  0x10   : > { %p636_p11 = por %p91_p7, %p35_p0  ;;  %p640_p12 = por %p97_p8, %p41_p3 }
  0x11   : > { %s383_s24 = sshll.u32 %s569_s12, 4  ;;  %s368_s25 = sshll.u32 %s645_s23, 4 }
  0x12   : > { %s126_s28 = scalar_lea.hbm %s753_s0, %s383_s24  ;;  %s121_s30 = scalar_lea.vmem [#allocation2], %s368_s25 }
  0x13   : > { %s128_s29 = sshll.u32 %s126_s28, 4  ;;  %s130_s3 = sshll.u32 %s121_s30, 4  ;;  %s129_s29 = int_to_ptr.hbm [resolvable:$true] %s128_s29  ;;  %s131_s3 = int_to_ptr.vmem [resolvable:$true] %s130_s3 }
  0x14   : > { %p654_p13 = pnand %p403_p10, %p625_p5  ;;  %p374_p0 = scmp.ge.s32.totalorder %s569_s12, 1 }
  0x15   : > { %p155_p1 = scmp.lt.s32.totalorder %s569_s12, 3  ;;  %s371_s5 = sshll.u32 %s645_s23, 6 }
  0x16   : > { %s118_s6 = scalar_lea.sflag [#allocation3], %s645_s23  ;;  %s439_s7 = sshra.s32 %s129_s29, 4  ;;  %s440_s7 = int_to_ptr.hbm [resolvable:$true] %s439_s7 }
  0x17   : > { %s441_s8 = scalar_lea.hbm %s440_s7, 16  ;;  %p443_p3 = pneg %p654_p13 }
  0x18   : > { %p442_p2 = scmp.ne.s32.totalorder %s440_s7, %s441_s8  ;;  %s446_s17 = scalar_lea.hbm %s753_s0, 32 }
  0x19   : > { %p447_p5 = scmp.lt.s32.totalorder %s440_s7, %s753_s0  ;;  %p448_p8 = scmp.lt.s32.totalorder %s446_s17, %s441_s8 }
  0x1a   : > { %p444_p4 = pnand %p443_p3, %p442_p2 }
  0x1b   : > { %p449_p10 = por %p448_p8, %p447_p5 }
  0x1c   : > { %p445_p7 = pneg %p444_p4 }
  0x1e   : > { %p450_p9 = pnand %p449_p10, %p445_p7 }
  0x20   : > { %453 = shalt.err (!%p450_p9)
}
  0x21   : > { %395 = dma.hbm_to_vmem [thread:$0]  (!%p654_p13), %s129_s29, 256, %s131_s3, %s118_s6  }
  0x22   : > { %p679_p2 = pnand %p374_p0, %p155_p1  ;;  %s384_s26 = sshll.u32 %s569_s12, 6 }
  0x23   : > { %s141_s27 = scalar_lea.vmem [#allocation5], %s371_s5  ;;  %s146_s8 = scalar_lea.hbm %s754_s1, %s384_s26 }
  0x24   : > { %s150_s28 = sshll.u32 %s141_s27, 4  ;;  %s148_s14 = sshll.u32 %s146_s8, 4  ;;  %s151_s28 = int_to_ptr.vmem [resolvable:$true] %s150_s28  ;;  %s149_s14 = int_to_ptr.hbm [resolvable:$true] %s148_s14 }
  0x25   : > { %s138_s16 = scalar_lea.sflag [#allocation6], %s645_s23  ;;  %s469_s17 = sshra.s32 %s149_s14, 4  ;;  %s470_s17 = int_to_ptr.hbm [resolvable:$true] %s469_s17 }
  0x26   : > { %s471_s29 = scalar_lea.hbm %s470_s17, 64  ;;  %s476_s5 = scalar_lea.hbm %s754_s1, 128 }
  0x27   : > { %p472_p9 = scmp.ne.s32.totalorder %s470_s17, %s471_s29  ;;  %p477_p4 = scmp.lt.s32.totalorder %s470_s17, %s754_s1 }
  0x28   : > { %p478_p7 = scmp.lt.s32.totalorder %s476_s5, %s471_s29 }
  0x29   : > { %p474_p0 = pnand %p472_p9, %p443_p3 }
  0x2a   : > { %p479_p5 = por %p478_p7, %p477_p4 }
  0x2b   : > { %p475_p1 = pneg %p474_p0 }
  0x2d   : > { %p480_p8 = pnand %p479_p5, %p475_p1 }
  0x2f   : > { %483 = shalt.err (!%p480_p8)
}
  0x30   : > { %398 = dma.hbm_to_vmem [thread:$0]  (!%p654_p13), %s149_s14, 1024, %s151_s28, %s138_s16  }
  0x31   : > { %159 = sbr.rel (%p679_p2) target bundleno = 93 (0x5d), region = 28  ;;  %s702_s23 = sand.u32 (!%p679_p2), 1, %s561_s10  }
  0x32   : > { %s375_s26 = sshll.u32 (!%p679_p2), %s702_s23, 4  ;;  %s162_s27 = scalar_lea.sflag (!%p679_p2), [#allocation3], %s702_s23 }
  0x33   : > { %s165_s30 = scalar_lea.vmem (!%p679_p2), [#allocation2], %s375_s26 }
  0x36   : > { %544 = dma.done.wait (%p629_p6), %s162_s27, 256  }
  0x37   : > { %546 = vsyncadd (%p629_p6), %s162_s27, 4294967040  ;;  %s376_s4 = sshll.u32 %s702_s23, 6  ;;  %s172_s25 = scalar_lea.sflag [#allocation6], %s702_s23 }
  0x38   : > { %s175_s28 = scalar_lea.vmem [#allocation5], %s376_s4 }
  0x39   : > { %548 = dma.done.wait (%p629_p6), %s172_s25, 1024  }
  0x3a   : > { %550 = vsyncadd (%p629_p6), %s172_s25, 4294966272  ;;  %v202_v0 = vld [vmem:[%s165_s30] sm:$0xff]  ;;  %v203_v1 = vld [vmem:[%s165_s30 + $0x8] sm:$0xff]  ;;  %s385_s20 = sshll.u32 %s607_s13, 4  ;;  %s201_s16 = scalar_lea.vmem [#allocation7], %s375_s26 }
  0x3b   : > { %v208_v2 = vld [vmem:[%s175_s28 + $0x20] sm:$0xff]  ;;  %v209_v3 = vld [vmem:[%s175_s28 + $0x28] sm:$0xff]  ;;  %v210_v8 = vld [vmem:[%s175_s28 + $0x30] sm:$0xff]  ;;  %s267_s14 = scalar_lea.hbm %s755_s2, %s385_s20  ;;  %s269_s17 = sshll.u32 %s201_s16, 4  ;;  %s270_s17 = int_to_ptr.vmem [resolvable:$true] %s269_s17 }
  0x3c   : > { %v220_v4 = vmul.f32 %v208_v2, %v202_v0  ;;  %v221_v5 = vmul.f32 %v209_v3, %v203_v1  ;;  %v224_v6 = vmul.f32 %v209_v3, %v202_v0  ;;  %v225_v7 = vmul.f32 %v208_v2, %v203_v1  ;;  %v211_v9 = vld [vmem:[%s175_s28 + $0x38] sm:$0xff]  ;;  %v204_v10 = vld [vmem:[%s175_s28] sm:$0xff]  ;;  %v205_v11 = vld [vmem:[%s175_s28 + $0x8] sm:$0xff]  ;;  %s271_s29 = sshll.u32 %s267_s14, 4  ;;  %s256_s13 = scalar_lea.sflag [#allocation4], %s702_s23  ;;  %s272_s29 = int_to_ptr.hbm [resolvable:$true] %s271_s29 }
  0x3d   : > { %v212_v16 = vmul.f32 %v204_v10, %v202_v0  ;;  %v213_v17 = vmul.f32 %v205_v11, %v203_v1  ;;  %v216_v18 = vmul.f32 %v205_v11, %v202_v0  ;;  %v217_v19 = vmul.f32 %v204_v10, %v203_v1  ;;  %v206_v24 = vld [vmem:[%s175_s28 + $0x10] sm:$0xff]  ;;  %v207_v26 = vld [vmem:[%s175_s28 + $0x18] sm:$0xff]  ;;  %s513_s3 = sshra.s32 %s272_s29, 4  ;;  %s519_s24 = scalar_lea.hbm %s755_s2, 32  ;;  %s514_s3 = int_to_ptr.hbm [resolvable:$true] %s513_s3 }
  0x3e   : > { %v222_v12 = vsub.f32 %v220_v4, %v221_v5  ;;  %v226_v13 = vadd.f32 %v225_v7, %v224_v6  ;;  %s515_s6 = scalar_lea.hbm %s514_s3, 16  ;;  %p520_p10 = scmp.lt.s32.totalorder %s514_s3, %s755_s2 }
  0x3f   : > { %v214_v23 = vsub.f32 %v212_v16, %v213_v17  ;;  %v218_v25 = vadd.f32 %v217_v19, %v216_v18  ;;  %p516_p6 = scmp.ne.s32.totalorder %s514_s3, %s515_s6  ;;  %p521_p2 = scmp.lt.s32.totalorder %s519_s24, %s515_s6 }
  0x40   : > { %v223_v14 = vadd.f32 %v222_v12, %v210_v8  ;;  %v227_v15 = vadd.f32 %v226_v13, %v211_v9 }
  0x41   : > { %v215_v27 = vadd.f32 %v214_v23, %v206_v24  ;;  %v219_v28 = vadd.f32 %v218_v25, %v207_v26  ;;  %p517_p13 = pnand %p516_p6, %p636_p11  ;;  %p522_p9 = por %p521_p2, %p520_p10 }
  0x42   : > { %v228_v20 = vmul.f32 %v223_v14, %v223_v14  ;;  %v229_v21 = vmul.f32 %v227_v15, %v227_v15 }
  0x43   : > { %v245_v31 = vmul.f32 %v223_v14, %v215_v27  ;;  %v246_v33 = vmul.f32 %v227_v15, %v219_v28  ;;  %v249_v34 = vmul.f32 %v223_v14, %v219_v28  ;;  %v250_v35 = vmul.f32 %v227_v15, %v215_v27  ;;  %p518_p3 = pneg %p517_p13 }
  0x44   : > { %v230_v22 = vadd.f32 %v229_v21, %v228_v20 }
  0x45   : > { %v247_v41 = vadd.f32 %v246_v33, %v245_v31  ;;  %v251_v42 = vsub.f32 %v249_v34, %v250_v35  ;;  %p523_p0 = pnand %p522_p9, %p518_p3 }
  0x46   : > { %437 = vrcp.f32 %v230_v22  ;;  %v242_v32 = vand.u32 2147483648, %v230_v22  ;;  %vm236_vm0 = vweird.f32 %v230_v22  ;;  %v240_v37 = vand.u32 2147483647, %v230_v22 }
  0x48   : > { %v243_v39 = vor.u32 1.1754944e-38, %v242_v32  ;;  %vm241_vm3 = vcmp.eq.f32.partialorder %v240_v37, 8.507059e+37 }
  0x4c   : > { %v438_v29 = vpop.eup %437 }
  0x4d   : > { %v232_v30 = vmul.f32 %v438_v29, %v230_v22  ;;  %vm237_vm1 = vweird.f32 %v438_v29 }
  0x4e   : > { %vm238_vm2 = vmor %vm236_vm0, %vm237_vm1 }
  0x4f   : > { %v233_v36 = vsub.f32 1.0, %v232_v30 }
  0x51   : > { %v234_v38 = vmul.f32 %v438_v29, %v233_v36 }
  0x53   : > { %v235_v40 = vadd.f32 %v438_v29, %v234_v38 }
  0x55   : > { %v239_v43 = vsel %vm238_vm2, %v438_v29, %v235_v40 }
  0x56   : > { %v244_v44 = vsel %vm241_vm3, %v243_v39, %v239_v43 }
  0x57   : > { %v248_v45 = vmul.f32 %v247_v41, %v244_v44  ;;  %v252_v46 = vmul.f32 %v251_v42, %v244_v44 }
  0x59   : > { %253 = vst [vmem:[%s201_s16] sm:$0xff] %v248_v45 }
  0x5a   : > { %254 = vst [vmem:[%s201_s16 + $0x8] sm:$0xff] %v252_v46 }
  0x5b   : > { %526 = shalt.err (!%p523_p0)
}
  0x5c   : > { %390 = dma.vmem_to_hbm [thread:$0]  (%p636_p11), %s270_s17, 256, %s272_s29, %s256_s13  }
  0x5d PF: > { %s283_s23 = sand.u32 1, %s557_s9   ;;  %p762_p1 = scmp.ge.s32.totalorder %s569_s12, 2 }
  0x5e   : > { %s284_s30 = scalar_lea.sflag [#allocation4], %s283_s23 }
  0x5f   : > { %p400_p4 = pnand %p762_p1, %p640_p12 }
  0x61   : > { %p401_p7 = pneg %p400_p4 }
  0x63   : > { %552 = dma.done.wait (%p401_p7), %s284_s30, 256  }
  0x64   : > { %554 = vsyncadd (%p401_p7), %s284_s30, 4294967040  ;;  %p18_p5 = scmp.ge.s32.totalorder %s611_s15, 4   ;;  %s763_s9 = smov %s561_s10 }
  0x65   : > { %s764_s10 = smov %s565_s11  ;;  %s765_s11 = smov %s623_s18 }
  0x66   : > { %s766_s12 = smov %s611_s15  ;;  %20 = sbr.rel (!%p18_p5) target bundleno = 7 (0x7), region = 86 }
  0x6b   :  { %290 = vsyncpa [#allocation3], 1 }
  0x6c   :  { %292 = vsyncpa [#allocation3 + $0x1], 1 }
  0x6d   :  { %293 = vsyncpa [#allocation6], 1 }
  0x6e   :  { %295 = vsyncpa [#allocation6 + $0x1], 1 }
  0x6f   :  { %296 = vsyncpa [#allocation4], 1 }
  0x70   :  { %298 = vsyncpa [#allocation4 + $0x1], 1 }

</bundles_post_ra>
